<compile_context>
chip_gen: v7x
topology: tpu7x:2x2x1
jax: 0.10.0
libtpu: 0.0.40
codegen_flags: <defaults>
</compile_context>

<pallas_src>
import jax
import jax.numpy as jnp
from jax.experimental import pallas as pl
from jax.experimental.pallas import tpu as pltpu


_LANES = 128                 # vreg lane width
_TILE_ROWS = 4096            # 4096 x 128 x 4 B = 2 MiB per f32 tile
_SMALL_N_ELEMS = 64 * 1024   # below this, plain XLA elementwise is faster


def _linear_kernel(w_ref, b_ref, x_ref, o_ref):
    # w_ref, b_ref: (1,) f32 scalars in SMEM; x_ref/o_ref: (tile_rows, 128) VMEM tiles.
    w = w_ref[0]
    b = b_ref[0]
    o_ref[...] = x_ref[...] * w + b


def linear_regression_forward(x, weight, bias):
    """Pallas forward for nn.Linear(1, 1).

    x:      (N, 1) float32  (PyTorch (batch, in_features) layout)
    weight: (1, 1) float32  (torch Linear.weight convention)
    bias:   (1,)   float32
    returns (N, 1) float32
    """
    n = x.shape[0]
    if n == 0:
        return jnp.zeros((0, 1), jnp.float32)

    x_flat = x.reshape(-1).astype(jnp.float32)
    total = x_flat.shape[0]

    # Small-N fast path: pad/reshape/launch overhead dominates a 2-pass
    # bandwidth-bound op at these sizes; let XLA fuse the elementwise map.
    if total < _SMALL_N_ELEMS:
        w0 = weight.reshape(()).astype(jnp.float32)
        b0 = bias.reshape(()).astype(jnp.float32)
        return (x_flat * w0 + b0).reshape(n, 1)

    # Lane-dense slab: pad only to the next multiple of 128 (<=127 elements).
    rows = pl.cdiv(total, _LANES)
    padded_total = rows * _LANES
    needs_pad = padded_total != total
    if needs_pad:
        x_flat = jnp.pad(x_flat, (0, padded_total - total))
    x2d = x_flat.reshape(rows, _LANES)

    # Tile the row axis; ragged last block is masked by Pallas automatically.
    tile_rows = min(_TILE_ROWS, rows)   # tile == full array when rows <= 4096
    grid = (pl.cdiv(rows, tile_rows),)

    w_s = weight.reshape(1).astype(jnp.float32)   # scalar -> SMEM
    b_s = bias.reshape(1).astype(jnp.float32)     # scalar -> SMEM

    out2d = pl.pallas_call(
        _linear_kernel,
        out_shape=jax.ShapeDtypeStruct((rows, _LANES), jnp.float32),
        grid=grid,
        in_specs=[
            pl.BlockSpec(memory_space=pltpu.MemorySpace.SMEM),    # weight scalar
            pl.BlockSpec(memory_space=pltpu.MemorySpace.SMEM),    # bias scalar
            pl.BlockSpec((tile_rows, _LANES), lambda i: (i, 0)),  # x row tile
        ],
        out_specs=pl.BlockSpec((tile_rows, _LANES), lambda i: (i, 0)),
        compiler_params=pltpu.CompilerParams(
            dimension_semantics=("parallel",),
            vmem_limit_bytes=32 << 20,   # 2 MiB tile x (in+out) x 2 buffers = 8 MiB used
        ),
    )(w_s, b_s, x2d)

    out_flat = out2d.reshape(-1)
    if needs_pad:
        out_flat = out_flat[:total]
    return out_flat.reshape(n, 1)


if __name__ == "__main__":
    key = jax.random.PRNGKey(0)
    k_x, k_w, k_b, k_x2, k_x3, k_x4 = jax.random.split(key, 6)

    # Deterministic parameter init mimicking nn.Linear's U(-1/sqrt(fan_in), 1/sqrt(fan_in))
    # with fan_in = 1  ->  U(-1, 1).
    weight = jax.random.uniform(k_w, (1, 1), minval=-1.0, maxval=1.0, dtype=jnp.float32)
    bias = jax.random.uniform(k_b, (1,), minval=-1.0, maxval=1.0, dtype=jnp.float32)

    def check(x):
        out = jax.block_until_ready(linear_regression_forward(x, weight, bias))
        ref = x @ weight.T + bias
        assert out.shape == ref.shape
        assert jnp.allclose(out, ref, atol=1e-6), f"mismatch vs reference (N={x.shape[0]})"

    # Small batches matching Linear(1, 1): exercised via the small-N fast path.
    check(jax.random.normal(k_x, (8, 1), dtype=jnp.float32))
    check(jax.random.normal(k_x2, (300, 1), dtype=jnp.float32))

    # Pallas path, N a multiple of 128 (no pad / no slice-back), single-tile grid.
    check(jax.random.normal(k_x3, (131072, 1), dtype=jnp.float32))

    # Pallas path, ragged N spanning >1 tile: exercises <=127-element pad,
    # multi-step "parallel" grid, and the ragged last block.
    check(jax.random.normal(k_x4, (_TILE_ROWS * _LANES + 777, 1), dtype=jnp.float32))

    print("KERNEL_OK")
</pallas_src>

<mosaic_0001>
module attributes {stable_mosaic.version = 11 : i64} {
  func.func @_linear_kernel(%arg0: i32, %arg1: memref<1xf32, #tpu.memory_space<smem>>, %arg2: memref<1xf32, #tpu.memory_space<smem>>, %arg3: memref<1024x128xf32, #tpu.memory_space<vmem>>, %arg4: memref<1024x128xf32, #tpu.memory_space<vmem>>) attributes {dimension_semantics = [#tpu.dimension_semantics<parallel>], iteration_bounds = array<i64: 1>, scalar_prefetch = 0 : i64, scratch_operands = 0 : i64, tpu.core_type = #tpu.core_type<tc>, window_params = [{transform_indices = @transform_0, window_bounds = array<i64: 1>}, {transform_indices = @transform_1, window_bounds = array<i64: 1>}, {transform_indices = @transform_2, window_bounds = array<i64: 1024, 128>}, {transform_indices = @transform_3, window_bounds = array<i64: 1024, 128>}]} {
    %c0 = arith.constant 0 : index
    %0 = memref.load %arg1[%c0] : memref<1xf32, #tpu.memory_space<smem>>
    %c0_0 = arith.constant 0 : index
    %1 = memref.load %arg2[%c0_0] : memref<1xf32, #tpu.memory_space<smem>>
    %c0_1 = arith.constant 0 : index
    %c0_2 = arith.constant 0 : index
    %2 = vector.load %arg3[%c0_1, %c0_2] : memref<1024x128xf32, #tpu.memory_space<vmem>>, vector<1024x128xf32>
    %3 = vector.broadcast %0 : f32 to vector<1024x128xf32>
    %4 = arith.mulf %2, %3 : vector<1024x128xf32>
    %5 = vector.broadcast %1 : f32 to vector<1024x128xf32>
    %6 = arith.addf %4, %5 : vector<1024x128xf32>
    %c0_3 = arith.constant 0 : index
    %c0_4 = arith.constant 0 : index
    %7 = vector.load %arg4[%c0_3, %c0_4] : memref<1024x128xf32, #tpu.memory_space<vmem>>, vector<1024x128xf32>
    tpu.vector_store %arg4[%c0_3, %c0_4], %6 {strides = array<i32>} : memref<1024x128xf32, #tpu.memory_space<vmem>>, vector<1024x128xf32>,
    return
  }
  func.func @transform_0(%arg0: i32) -> i32 {
    %c0_i32 = arith.constant 0 : i32
    %c0_i32_0 = arith.constant 0 : i32
    return %c0_i32 : i32
  }
  func.func @transform_1(%arg0: i32) -> i32 {
    %c0_i32 = arith.constant 0 : i32
    %c0_i32_0 = arith.constant 0 : i32
    return %c0_i32 : i32
  }
  func.func @transform_2(%arg0: i32) -> (i32, i32) {
    %c0_i32 = arith.constant 0 : i32
    %c0_i32_0 = arith.constant 0 : i32
    return %arg0, %c0_i32 : i32, i32
  }
  func.func @transform_3(%arg0: i32) -> (i32, i32) {
    %c0_i32 = arith.constant 0 : i32
    %c0_i32_0 = arith.constant 0 : i32
    return %arg0, %c0_i32 : i32, i32
  }
}

</mosaic_0001>

<bundles_post_ra>
// kernel: tpu_custom_call.1
= control target key start
LH: loop header
LB: loop body
LE: loop exit
PB: predicated region body
PF: predicated region fallthrough
CT: control target
= control target key end

     0   :  { %10 = vsyncpa [#allocation5], 0  ;;  %s936_s0 = inlined_call_operand.<no memory space> [shape: f32[1], index: 0, kind: input, shape index: {}]   ;;  %s937_s1 = inlined_call_operand.<no memory space> [shape: f32[1], index: 1, kind: input, shape index: {}]   ;;  %s938_s2 = inlined_call_operand.hbm [shape: f32[1024,128], index: 2, kind: input, shape index: {}]   ;;  %s939_s3 = inlined_call_operand.hbm [shape: f32[1024,128], index: 3, kind: output, shape index: {}]  }
   0x1   :  { %11 = vsyncpa [#allocation6], 0  ;;  %s616_s12 = smov [#allocation4]   ;;  %s568_s16 = scalar_lea.hbm %s938_s2, 16384 }
   0x2   :  { %s21_s13 = sshll.u32 %s616_s12, 4  ;;  %p569_p0 = scmp.ne.s32.totalorder %s938_s2, %s568_s16  ;;  %s22_s13 = int_to_ptr.vmem [resolvable:$true] %s21_s13 }
   0x3   :  { %p572_p1 = scmp.lt.u32.totalorder %s568_s16, %s938_s2 }
   0x5   :  { %p574_p2 = pnand %p572_p1, %p569_p0 }
   0x7   :  { %577 = shalt.err (!%p574_p2)
}
   0x8   :  { %s578_s21 = scalar_lea.vmem %s22_s13, 16384  ;;  %p583_p4 = scmp.lt.s32.totalorder %s22_s13, %s22_s13 }
   0x9   :  { %p579_p3 = scmp.ne.s32.totalorder %s22_s13, %s578_s21  ;;  %p584_p5 = scmp.lt.s32.totalorder %s578_s21, %s578_s21 }
   0xb   :  { %p585_p6 = por %p584_p5, %p583_p4 }
   0xd   :  { %p586_p7 = pnand %p585_p6, %p579_p3 }
   0xf   :  { %589 = shalt.err (!%p586_p7)
}
  0x10   :  { %s617_s22 = smov 128   ;;  %s618_s23 = smov 8  }
  0x11   :  { %27 = dma.hbm_to_vmem [thread:$0]  %s938_s2, 16384, %s22_s13, [#allocation5], %s617_s22, %s617_s22, %s618_s23  }
  0x12   :  { %612 = dma.done.wait [#allocation5], 16384  }
  0x13   :  { %613 = vsyncadd [#allocation5], 4294950912  ;;  %v658_v0 = vstv %s936_s0  ;;  %v33_v1 = vld [vmem:[#allocation4] sm:$0xff]  ;;  %v663_v2 = vstv %s937_s1  ;;  %v34_v3 = vld [vmem:[#allocation4 + $0x8] sm:$0xff]  ;;  %s619_s0 = smov [#allocation7]  }
  0x14   :  { %v35_v4 = vld [vmem:[#allocation4 + $0x10] sm:$0xff]  ;;  %v162_v5 = vmul.f32 %v658_v0, %v33_v1  ;;  %v163_v6 = vmul.f32 %v658_v0, %v34_v3  ;;  %v36_v8 = vld [vmem:[#allocation4 + $0x18] sm:$0xff]  ;;  %v37_v9 = vld [vmem:[#allocation4 + $0x20] sm:$0xff]  ;;  %s552_s1 = sshll.u32 %s619_s0, 4  ;;  %s553_s1 = int_to_ptr.vmem [resolvable:$true] %s552_s1 }
  0x15   :  { %v164_v7 = vmul.f32 %v658_v0, %v35_v4  ;;  %v38_v10 = vld [vmem:[#allocation4 + $0x28] sm:$0xff]  ;;  %v165_v11 = vmul.f32 %v658_v0, %v36_v8  ;;  %v166_v12 = vmul.f32 %v658_v0, %v37_v9  ;;  %v39_v14 = vld [vmem:[#allocation4 + $0x30] sm:$0xff]  ;;  %v40_v15 = vld [vmem:[#allocation4 + $0x38] sm:$0xff]  ;;  %s590_s2 = scalar_lea.vmem %s553_s1, 16384  ;;  %p595_p9 = scmp.lt.s32.totalorder %s553_s1, %s553_s1 }
  0x16   :  { %v167_v13 = vmul.f32 %v658_v0, %v38_v10  ;;  %v41_v16 = vld [vmem:[#allocation4 + $0x40] sm:$0xff]  ;;  %v291_v17 = vadd.f32 %v663_v2, %v162_v5  ;;  %v292_v18 = vadd.f32 %v663_v2, %v163_v6  ;;  %v168_v20 = vmul.f32 %v658_v0, %v39_v14  ;;  %v42_v21 = vld [vmem:[#allocation4 + $0x48] sm:$0xff]  ;;  %v43_v22 = vld [vmem:[#allocation4 + $0x50] sm:$0xff]  ;;  %p591_p8 = scmp.ne.s32.totalorder %s553_s1, %s590_s2  ;;  %p596_p10 = scmp.lt.s32.totalorder %s590_s2, %s590_s2 }
  0x17   :  { %v293_v19 = vadd.f32 %v663_v2, %v164_v7  ;;  %v44_v23 = vld [vmem:[#allocation4 + $0x58] sm:$0xff]  ;;  %v294_v24 = vadd.f32 %v663_v2, %v165_v11  ;;  %v295_v25 = vadd.f32 %v663_v2, %v166_v12  ;;  %v169_v27 = vmul.f32 %v658_v0, %v40_v15  ;;  %v45_v28 = vld [vmem:[#allocation4 + $0x60] sm:$0xff]  ;;  %v46_v29 = vld [vmem:[#allocation4 + $0x68] sm:$0xff] }
  0x18   :  { %v296_v26 = vadd.f32 %v663_v2, %v167_v13  ;;  %v47_v30 = vld [vmem:[#allocation4 + $0x70] sm:$0xff]  ;;  %419 = vst [vmem:[#allocation7] sm:$0xff] %v291_v17  ;;  %420 = vst [vmem:[#allocation7 + $0x8] sm:$0xff] %v292_v18  ;;  %v297_v31 = vadd.f32 %v663_v2, %v168_v20  ;;  %v170_v32 = vmul.f32 %v658_v0, %v41_v16  ;;  %v48_v35 = vld [vmem:[#allocation4 + $0x78] sm:$0xff]  ;;  %p597_p11 = por %p596_p10, %p595_p9 }
  0x19   :  { %421 = vst [vmem:[#allocation7 + $0x10] sm:$0xff] %v293_v19  ;;  %v171_v33 = vmul.f32 %v658_v0, %v42_v21  ;;  %v172_v34 = vmul.f32 %v658_v0, %v43_v22  ;;  %422 = vst [vmem:[#allocation7 + $0x18] sm:$0xff] %v294_v24  ;;  %v298_v36 = vadd.f32 %v663_v2, %v169_v27  ;;  %v49_v40 = vld [vmem:[#allocation4 + $0x80] sm:$0xff]  ;;  %v50_v41 = vld [vmem:[#allocation4 + $0x88] sm:$0xff] }
  0x1a   :  { %423 = vst [vmem:[#allocation7 + $0x20] sm:$0xff] %v295_v25  ;;  %424 = vst [vmem:[#allocation7 + $0x28] sm:$0xff] %v296_v26  ;;  %v173_v37 = vmul.f32 %v658_v0, %v44_v23  ;;  %v174_v38 = vmul.f32 %v658_v0, %v45_v28  ;;  %v175_v39 = vmul.f32 %v658_v0, %v46_v29  ;;  %v51_v42 = vld [vmem:[#allocation4 + $0x90] sm:$0xff]  ;;  %v52_v47 = vld [vmem:[#allocation4 + $0x98] sm:$0xff]  ;;  %p598_p12 = pnand %p597_p11, %p591_p8 }
  0x1b   :  { %425 = vst [vmem:[#allocation7 + $0x30] sm:$0xff] %v297_v31  ;;  %v299_v43 = vadd.f32 %v663_v2, %v170_v32  ;;  %v300_v44 = vadd.f32 %v663_v2, %v171_v33  ;;  %v301_v45 = vadd.f32 %v663_v2, %v172_v34  ;;  %v176_v46 = vmul.f32 %v658_v0, %v47_v30  ;;  %v53_v48 = vld [vmem:[#allocation4 + $0xa0] sm:$0xff]  ;;  %v54_v49 = vld [vmem:[#allocation4 + $0xa8] sm:$0xff]  ;;  %v55_v54 = vld [vmem:[#allocation4 + $0xb0] sm:$0xff] }
  0x1c   :  { %426 = vst [vmem:[#allocation7 + $0x38] sm:$0xff] %v298_v36  ;;  %v302_v50 = vadd.f32 %v663_v2, %v173_v37  ;;  %v303_v51 = vadd.f32 %v663_v2, %v174_v38  ;;  %v304_v52 = vadd.f32 %v663_v2, %v175_v39  ;;  %v177_v53 = vmul.f32 %v658_v0, %v48_v35  ;;  %v56_v59 = vld [vmem:[#allocation4 + $0xb8] sm:$0xff]  ;;  %v57_v1 = vld [vmem:[#allocation4 + $0xc0] sm:$0xff]  ;;  %v58_v3 = vld [vmem:[#allocation4 + $0xc8] sm:$0xff] }
  0x1d   :  { %427 = vst [vmem:[#allocation7 + $0x40] sm:$0xff] %v299_v43  ;;  %428 = vst [vmem:[#allocation7 + $0x48] sm:$0xff] %v300_v44  ;;  %v305_v55 = vadd.f32 %v663_v2, %v176_v46  ;;  %v178_v56 = vmul.f32 %v658_v0, %v49_v40  ;;  %v179_v57 = vmul.f32 %v658_v0, %v50_v41  ;;  %v59_v4 = vld [vmem:[#allocation4 + $0xd0] sm:$0xff]  ;;  %v60_v9 = vld [vmem:[#allocation4 + $0xd8] sm:$0xff] }
  0x1e   :  { %429 = vst [vmem:[#allocation7 + $0x50] sm:$0xff] %v301_v45  ;;  %v180_v58 = vmul.f32 %v658_v0, %v51_v42  ;;  %430 = vst [vmem:[#allocation7 + $0x58] sm:$0xff] %v302_v50  ;;  %v306_v60 = vadd.f32 %v663_v2, %v177_v53  ;;  %v181_v61 = vmul.f32 %v658_v0, %v52_v47  ;;  %v61_v10 = vld [vmem:[#allocation4 + $0xe0] sm:$0xff]  ;;  %v62_v11 = vld [vmem:[#allocation4 + $0xe8] sm:$0xff] }
  0x1f   :  { %431 = vst [vmem:[#allocation7 + $0x60] sm:$0xff] %v303_v51  ;;  %432 = vst [vmem:[#allocation7 + $0x68] sm:$0xff] %v304_v52  ;;  %v182_v62 = vmul.f32 %v658_v0, %v53_v48  ;;  %v183_v63 = vmul.f32 %v658_v0, %v54_v49  ;;  %v307_v5 = vadd.f32 %v663_v2, %v178_v56  ;;  %v63_v16 = vld [vmem:[#allocation4 + $0xf0] sm:$0xff]  ;;  %v64_v21 = vld [vmem:[#allocation4 + $0xf8] sm:$0xff] }
  0x20   :  { %433 = vst [vmem:[#allocation7 + $0x70] sm:$0xff] %v305_v55  ;;  %v308_v6 = vadd.f32 %v663_v2, %v179_v57  ;;  %v309_v7 = vadd.f32 %v663_v2, %v180_v58  ;;  %v184_v8 = vmul.f32 %v658_v0, %v55_v54  ;;  %434 = vst [vmem:[#allocation7 + $0x78] sm:$0xff] %v306_v60  ;;  %v65_v26 = vld [vmem:[#allocation4 + $0x100] sm:$0xff]  ;;  %v66_v27 = vld [vmem:[#allocation4 + $0x108] sm:$0xff] }
  0x21   :  { %v310_v12 = vadd.f32 %v663_v2, %v181_v61  ;;  %v311_v13 = vadd.f32 %v663_v2, %v182_v62  ;;  %v312_v14 = vadd.f32 %v663_v2, %v183_v63  ;;  %v185_v15 = vmul.f32 %v658_v0, %v56_v59  ;;  %435 = vst [vmem:[#allocation7 + $0x80] sm:$0xff] %v307_v5  ;;  %v67_v28 = vld [vmem:[#allocation4 + $0x110] sm:$0xff]  ;;  %v68_v33 = vld [vmem:[#allocation4 + $0x118] sm:$0xff]  ;;  %v69_v34 = vld [vmem:[#allocation4 + $0x120] sm:$0xff] }
  0x22   :  { %436 = vst [vmem:[#allocation7 + $0x88] sm:$0xff] %v308_v6  ;;  %437 = vst [vmem:[#allocation7 + $0x90] sm:$0xff] %v309_v7  ;;  %v313_v17 = vadd.f32 %v663_v2, %v184_v8  ;;  %v186_v18 = vmul.f32 %v658_v0, %v57_v1  ;;  %v187_v19 = vmul.f32 %v658_v0, %v58_v3  ;;  %v70_v35 = vld [vmem:[#allocation4 + $0x128] sm:$0xff]  ;;  %v71_v40 = vld [vmem:[#allocation4 + $0x130] sm:$0xff] }
  0x23   :  { %v188_v20 = vmul.f32 %v658_v0, %v59_v4  ;;  %438 = vst [vmem:[#allocation7 + $0x98] sm:$0xff] %v310_v12  ;;  %439 = vst [vmem:[#allocation7 + $0xa0] sm:$0xff] %v311_v13  ;;  %v314_v22 = vadd.f32 %v663_v2, %v185_v15  ;;  %v189_v23 = vmul.f32 %v658_v0, %v60_v9  ;;  %v72_v45 = vld [vmem:[#allocation4 + $0x138] sm:$0xff]  ;;  %v73_v50 = vld [vmem:[#allocation4 + $0x140] sm:$0xff] }
  0x24   :  { %440 = vst [vmem:[#allocation7 + $0xa8] sm:$0xff] %v312_v14  ;;  %v190_v24 = vmul.f32 %v658_v0, %v61_v10  ;;  %v191_v25 = vmul.f32 %v658_v0, %v62_v11  ;;  %441 = vst [vmem:[#allocation7 + $0xb0] sm:$0xff] %v313_v17  ;;  %v315_v29 = vadd.f32 %v663_v2, %v186_v18  ;;  %v74_v51 = vld [vmem:[#allocation4 + $0x148] sm:$0xff]  ;;  %v75_v52 = vld [vmem:[#allocation4 + $0x150] sm:$0xff] }
  0x25   :  { %v316_v30 = vadd.f32 %v663_v2, %v187_v19  ;;  %v317_v31 = vadd.f32 %v663_v2, %v188_v20  ;;  %v192_v32 = vmul.f32 %v658_v0, %v63_v16  ;;  %442 = vst [vmem:[#allocation7 + $0xb8] sm:$0xff] %v314_v22  ;;  %v318_v36 = vadd.f32 %v663_v2, %v189_v23  ;;  %v76_v57 = vld [vmem:[#allocation4 + $0x158] sm:$0xff]  ;;  %v77_v58 = vld [vmem:[#allocation4 + $0x160] sm:$0xff]  ;;  %v78_v59 = vld [vmem:[#allocation4 + $0x168] sm:$0xff] }
  0x26   :  { %v319_v37 = vadd.f32 %v663_v2, %v190_v24  ;;  %v320_v38 = vadd.f32 %v663_v2, %v191_v25  ;;  %v193_v39 = vmul.f32 %v658_v0, %v64_v21  ;;  %443 = vst [vmem:[#allocation7 + $0xc0] sm:$0xff] %v315_v29  ;;  %v194_v42 = vmul.f32 %v658_v0, %v65_v26  ;;  %v79_v1 = vld [vmem:[#allocation4 + $0x170] sm:$0xff]  ;;  %v80_v7 = vld [vmem:[#allocation4 + $0x178] sm:$0xff]  ;;  %v81_v12 = vld [vmem:[#allocation4 + $0x180] sm:$0xff] }
  0x27   :  { %444 = vst [vmem:[#allocation7 + $0xc8] sm:$0xff] %v316_v30  ;;  %445 = vst [vmem:[#allocation7 + $0xd0] sm:$0xff] %v317_v31  ;;  %v321_v41 = vadd.f32 %v663_v2, %v192_v32  ;;  %v195_v43 = vmul.f32 %v658_v0, %v66_v27  ;;  %v196_v44 = vmul.f32 %v658_v0, %v67_v28  ;;  %v82_v13 = vld [vmem:[#allocation4 + $0x188] sm:$0xff]  ;;  %v83_v14 = vld [vmem:[#allocation4 + $0x190] sm:$0xff] }
  0x28   :  { %446 = vst [vmem:[#allocation7 + $0xd8] sm:$0xff] %v318_v36  ;;  %447 = vst [vmem:[#allocation7 + $0xe0] sm:$0xff] %v319_v37  ;;  %v322_v46 = vadd.f32 %v663_v2, %v193_v39  ;;  %v197_v47 = vmul.f32 %v658_v0, %v68_v33  ;;  %v198_v48 = vmul.f32 %v658_v0, %v69_v34  ;;  %v84_v19 = vld [vmem:[#allocation4 + $0x198] sm:$0xff]  ;;  %v85_v20 = vld [vmem:[#allocation4 + $0x1a0] sm:$0xff] }
  0x29   :  { %448 = vst [vmem:[#allocation7 + $0xe8] sm:$0xff] %v320_v38  ;;  %v199_v49 = vmul.f32 %v658_v0, %v70_v35  ;;  %449 = vst [vmem:[#allocation7 + $0xf0] sm:$0xff] %v321_v41  ;;  %v323_v53 = vadd.f32 %v663_v2, %v194_v42  ;;  %v324_v54 = vadd.f32 %v663_v2, %v195_v43  ;;  %v86_v21 = vld [vmem:[#allocation4 + $0x1a8] sm:$0xff]  ;;  %v87_v26 = vld [vmem:[#allocation4 + $0x1b0] sm:$0xff] }
  0x2a   :  { %v325_v55 = vadd.f32 %v663_v2, %v196_v44  ;;  %v200_v56 = vmul.f32 %v658_v0, %v71_v40  ;;  %450 = vst [vmem:[#allocation7 + $0xf8] sm:$0xff] %v322_v46  ;;  %v326_v60 = vadd.f32 %v663_v2, %v197_v47  ;;  %v327_v61 = vadd.f32 %v663_v2, %v198_v48  ;;  %v88_v31 = vld [vmem:[#allocation4 + $0x1b8] sm:$0xff]  ;;  %v89_v36 = vld [vmem:[#allocation4 + $0x1c0] sm:$0xff]  ;;  %v90_v37 = vld [vmem:[#allocation4 + $0x1c8] sm:$0xff] }
  0x2b   :  { %v328_v62 = vadd.f32 %v663_v2, %v199_v49  ;;  %v201_v63 = vmul.f32 %v658_v0, %v72_v45  ;;  %451 = vst [vmem:[#allocation7 + $0x100] sm:$0xff] %v323_v53  ;;  %452 = vst [vmem:[#allocation7 + $0x108] sm:$0xff] %v324_v54  ;;  %v202_v4 = vmul.f32 %v658_v0, %v73_v50  ;;  %v91_v38 = vld [vmem:[#allocation4 + $0x1d0] sm:$0xff]  ;;  %v92_v43 = vld [vmem:[#allocation4 + $0x1d8] sm:$0xff] }
  0x2c   :  { %453 = vst [vmem:[#allocation7 + $0x110] sm:$0xff] %v325_v55  ;;  %v329_v3 = vadd.f32 %v663_v2, %v200_v56  ;;  %v203_v5 = vmul.f32 %v658_v0, %v74_v51  ;;  %v204_v6 = vmul.f32 %v658_v0, %v75_v52  ;;  %454 = vst [vmem:[#allocation7 + $0x118] sm:$0xff] %v326_v60  ;;  %v93_v44 = vld [vmem:[#allocation4 + $0x1e0] sm:$0xff]  ;;  %v94_v45 = vld [vmem:[#allocation4 + $0x1e8] sm:$0xff] }
  0x2d   :  { %455 = vst [vmem:[#allocation7 + $0x120] sm:$0xff] %v327_v61  ;;  %456 = vst [vmem:[#allocation7 + $0x128] sm:$0xff] %v328_v62  ;;  %v330_v8 = vadd.f32 %v663_v2, %v201_v63  ;;  %v205_v9 = vmul.f32 %v658_v0, %v76_v57  ;;  %v206_v10 = vmul.f32 %v658_v0, %v77_v58  ;;  %v95_v50 = vld [vmem:[#allocation4 + $0x1f0] sm:$0xff]  ;;  %v96_v55 = vld [vmem:[#allocation4 + $0x1f8] sm:$0xff] }
  0x2e   :  { %v207_v11 = vmul.f32 %v658_v0, %v78_v59  ;;  %457 = vst [vmem:[#allocation7 + $0x130] sm:$0xff] %v329_v3  ;;  %v331_v15 = vadd.f32 %v663_v2, %v202_v4  ;;  %v332_v16 = vadd.f32 %v663_v2, %v203_v5  ;;  %v333_v17 = vadd.f32 %v663_v2, %v204_v6  ;;  %v97_v60 = vld [vmem:[#allocation4 + $0x200] sm:$0xff]  ;;  %v98_v61 = vld [vmem:[#allocation4 + $0x208] sm:$0xff]  ;;  %v99_v62 = vld [vmem:[#allocation4 + $0x210] sm:$0xff] }
  0x2f   :  { %v208_v18 = vmul.f32 %v658_v0, %v79_v1  ;;  %458 = vst [vmem:[#allocation7 + $0x138] sm:$0xff] %v330_v8  ;;  %v334_v22 = vadd.f32 %v663_v2, %v205_v9  ;;  %v335_v23 = vadd.f32 %v663_v2, %v206_v10  ;;  %v209_v25 = vmul.f32 %v658_v0, %v80_v7  ;;  %v100_v5 = vld [vmem:[#allocation4 + $0x218] sm:$0xff]  ;;  %v101_v6 = vld [vmem:[#allocation4 + $0x220] sm:$0xff]  ;;  %v102_v7 = vld [vmem:[#allocation4 + $0x228] sm:$0xff] }
  0x30   :  { %v336_v24 = vadd.f32 %v663_v2, %v207_v11  ;;  %459 = vst [vmem:[#allocation7 + $0x140] sm:$0xff] %v331_v15  ;;  %460 = vst [vmem:[#allocation7 + $0x148] sm:$0xff] %v332_v16  ;;  %v210_v28 = vmul.f32 %v658_v0, %v81_v12  ;;  %v211_v29 = vmul.f32 %v658_v0, %v82_v13  ;;  %v103_v12 = vld [vmem:[#allocation4 + $0x230] sm:$0xff] }
  0x31   :  { %461 = vst [vmem:[#allocation7 + $0x150] sm:$0xff] %v333_v17  ;;  %v337_v27 = vadd.f32 %v663_v2, %v208_v18  ;;  %v212_v30 = vmul.f32 %v658_v0, %v83_v14  ;;  %462 = vst [vmem:[#allocation7 + $0x158] sm:$0xff] %v334_v22  ;;  %v338_v32 = vadd.f32 %v663_v2, %v209_v25  ;;  %v104_v17 = vld [vmem:[#allocation4 + $0x238] sm:$0xff]  ;;  %v105_v22 = vld [vmem:[#allocation4 + $0x240] sm:$0xff] }
  0x32   :  { %463 = vst [vmem:[#allocation7 + $0x160] sm:$0xff] %v335_v23  ;;  %464 = vst [vmem:[#allocation7 + $0x168] sm:$0xff] %v336_v24  ;;  %v213_v33 = vmul.f32 %v658_v0, %v84_v19  ;;  %v214_v34 = vmul.f32 %v658_v0, %v85_v20  ;;  %v215_v35 = vmul.f32 %v658_v0, %v86_v21  ;;  %v106_v23 = vld [vmem:[#allocation4 + $0x248] sm:$0xff]  ;;  %v107_v24 = vld [vmem:[#allocation4 + $0x250] sm:$0xff] }
  0x33   :  { %465 = vst [vmem:[#allocation7 + $0x170] sm:$0xff] %v337_v27  ;;  %v339_v39 = vadd.f32 %v663_v2, %v210_v28  ;;  %v340_v40 = vadd.f32 %v663_v2, %v211_v29  ;;  %v341_v41 = vadd.f32 %v663_v2, %v212_v30  ;;  %v216_v42 = vmul.f32 %v658_v0, %v87_v26  ;;  %v108_v29 = vld [vmem:[#allocation4 + $0x258] sm:$0xff]  ;;  %v109_v30 = vld [vmem:[#allocation4 + $0x260] sm:$0xff] }
  0x34   :  { %466 = vst [vmem:[#allocation7 + $0x178] sm:$0xff] %v338_v32  ;;  %v342_v46 = vadd.f32 %v663_v2, %v213_v33  ;;  %v343_v47 = vadd.f32 %v663_v2, %v214_v34  ;;  %v344_v48 = vadd.f32 %v663_v2, %v215_v35  ;;  %v217_v49 = vmul.f32 %v658_v0, %v88_v31  ;;  %v110_v31 = vld [vmem:[#allocation4 + $0x268] sm:$0xff] }
  0x35   :  { %467 = vst [vmem:[#allocation7 + $0x180] sm:$0xff] %v339_v39  ;;  %468 = vst [vmem:[#allocation7 + $0x188] sm:$0xff] %v340_v40  ;;  %v345_v51 = vadd.f32 %v663_v2, %v216_v42  ;;  %v218_v52 = vmul.f32 %v658_v0, %v89_v36  ;;  %v219_v53 = vmul.f32 %v658_v0, %v90_v37  ;;  %v111_v36 = vld [vmem:[#allocation4 + $0x270] sm:$0xff] }
  0x36   :  { %469 = vst [vmem:[#allocation7 + $0x190] sm:$0xff] %v341_v41  ;;  %v220_v54 = vmul.f32 %v658_v0, %v91_v38  ;;  %470 = vst [vmem:[#allocation7 + $0x198] sm:$0xff] %v342_v46  ;;  %v346_v56 = vadd.f32 %v663_v2, %v217_v49  ;;  %v221_v57 = vmul.f32 %v658_v0, %v92_v43  ;;  %v112_v41 = vld [vmem:[#allocation4 + $0x278] sm:$0xff]  ;;  %v113_v46 = vld [vmem:[#allocation4 + $0x280] sm:$0xff] }
  0x37   :  { %471 = vst [vmem:[#allocation7 + $0x1a0] sm:$0xff] %v343_v47  ;;  %472 = vst [vmem:[#allocation7 + $0x1a8] sm:$0xff] %v344_v48  ;;  %v222_v58 = vmul.f32 %v658_v0, %v93_v44  ;;  %v223_v59 = vmul.f32 %v658_v0, %v94_v45  ;;  %v347_v63 = vadd.f32 %v663_v2, %v218_v52  ;;  %v114_v47 = vld [vmem:[#allocation4 + $0x288] sm:$0xff]  ;;  %v115_v48 = vld [vmem:[#allocation4 + $0x290] sm:$0xff] }
  0x38   :  { %473 = vst [vmem:[#allocation7 + $0x1b0] sm:$0xff] %v345_v51  ;;  %v348_v1 = vadd.f32 %v663_v2, %v219_v53  ;;  %v349_v3 = vadd.f32 %v663_v2, %v220_v54  ;;  %v224_v4 = vmul.f32 %v658_v0, %v95_v50  ;;  %474 = vst [vmem:[#allocation7 + $0x1b8] sm:$0xff] %v346_v56  ;;  %v116_v53 = vld [vmem:[#allocation4 + $0x298] sm:$0xff]  ;;  %v117_v54 = vld [vmem:[#allocation4 + $0x2a0] sm:$0xff] }
  0x39   :  { %v350_v8 = vadd.f32 %v663_v2, %v221_v57  ;;  %v351_v9 = vadd.f32 %v663_v2, %v222_v58  ;;  %v352_v10 = vadd.f32 %v663_v2, %v223_v59  ;;  %v225_v11 = vmul.f32 %v658_v0, %v96_v55  ;;  %475 = vst [vmem:[#allocation7 + $0x1c0] sm:$0xff] %v347_v63  ;;  %v118_v55 = vld [vmem:[#allocation4 + $0x2a8] sm:$0xff] }
  0x3a   :  { %476 = vst [vmem:[#allocation7 + $0x1c8] sm:$0xff] %v348_v1  ;;  %477 = vst [vmem:[#allocation7 + $0x1d0] sm:$0xff] %v349_v3  ;;  %v353_v13 = vadd.f32 %v663_v2, %v224_v4  ;;  %v226_v14 = vmul.f32 %v658_v0, %v97_v60  ;;  %v227_v15 = vmul.f32 %v658_v0, %v98_v61  ;;  %v119_v60 = vld [vmem:[#allocation4 + $0x2b0] sm:$0xff]  ;;  %v120_v3 = vld [vmem:[#allocation4 + $0x2b8] sm:$0xff] }
  0x3b   :  { %v228_v16 = vmul.f32 %v658_v0, %v99_v62  ;;  %478 = vst [vmem:[#allocation7 + $0x1d8] sm:$0xff] %v350_v8  ;;  %479 = vst [vmem:[#allocation7 + $0x1e0] sm:$0xff] %v351_v9  ;;  %v354_v18 = vadd.f32 %v663_v2, %v225_v11  ;;  %v229_v19 = vmul.f32 %v658_v0, %v100_v5  ;;  %v121_v8 = vld [vmem:[#allocation4 + $0x2c0] sm:$0xff]  ;;  %v122_v9 = vld [vmem:[#allocation4 + $0x2c8] sm:$0xff] }
  0x3c   :  { %480 = vst [vmem:[#allocation7 + $0x1e8] sm:$0xff] %v352_v10  ;;  %v230_v20 = vmul.f32 %v658_v0, %v101_v6  ;;  %v231_v21 = vmul.f32 %v658_v0, %v102_v7  ;;  %481 = vst [vmem:[#allocation7 + $0x1f0] sm:$0xff] %v353_v13  ;;  %v355_v25 = vadd.f32 %v663_v2, %v226_v14  ;;  %v123_v10 = vld [vmem:[#allocation4 + $0x2d0] sm:$0xff] }
  0x3d   :  { %v356_v26 = vadd.f32 %v663_v2, %v227_v15  ;;  %v357_v27 = vadd.f32 %v663_v2, %v228_v16  ;;  %v232_v28 = vmul.f32 %v658_v0, %v103_v12  ;;  %482 = vst [vmem:[#allocation7 + $0x1f8] sm:$0xff] %v354_v18  ;;  %v358_v32 = vadd.f32 %v663_v2, %v229_v19  ;;  %v124_v15 = vld [vmem:[#allocation4 + $0x2d8] sm:$0xff]  ;;  %v125_v16 = vld [vmem:[#allocation4 + $0x2e0] sm:$0xff] }
  0x3e   :  { %v359_v33 = vadd.f32 %v663_v2, %v230_v20  ;;  %v360_v34 = vadd.f32 %v663_v2, %v231_v21  ;;  %v233_v35 = vmul.f32 %v658_v0, %v104_v17  ;;  %483 = vst [vmem:[#allocation7 + $0x200] sm:$0xff] %v355_v25  ;;  %v234_v38 = vmul.f32 %v658_v0, %v105_v22  ;;  %v126_v17 = vld [vmem:[#allocation4 + $0x2e8] sm:$0xff]  ;;  %v127_v22 = vld [vmem:[#allocation4 + $0x2f0] sm:$0xff] }
  0x3f   :  { %484 = vst [vmem:[#allocation7 + $0x208] sm:$0xff] %v356_v26  ;;  %485 = vst [vmem:[#allocation7 + $0x210] sm:$0xff] %v357_v27  ;;  %v361_v37 = vadd.f32 %v663_v2, %v232_v28  ;;  %v235_v39 = vmul.f32 %v658_v0, %v106_v23  ;;  %v236_v40 = vmul.f32 %v658_v0, %v107_v24  ;;  %v128_v27 = vld [vmem:[#allocation4 + $0x2f8] sm:$0xff] }
  0x40   :  { %486 = vst [vmem:[#allocation7 + $0x218] sm:$0xff] %v358_v32  ;;  %487 = vst [vmem:[#allocation7 + $0x220] sm:$0xff] %v359_v33  ;;  %v362_v42 = vadd.f32 %v663_v2, %v233_v35  ;;  %v237_v43 = vmul.f32 %v658_v0, %v108_v29  ;;  %v238_v44 = vmul.f32 %v658_v0, %v109_v30  ;;  %v129_v32 = vld [vmem:[#allocation4 + $0x300] sm:$0xff]  ;;  %v130_v33 = vld [vmem:[#allocation4 + $0x308] sm:$0xff] }
  0x41   :  { %488 = vst [vmem:[#allocation7 + $0x228] sm:$0xff] %v360_v34  ;;  %v239_v45 = vmul.f32 %v658_v0, %v110_v31  ;;  %489 = vst [vmem:[#allocation7 + $0x230] sm:$0xff] %v361_v37  ;;  %v363_v49 = vadd.f32 %v663_v2, %v234_v38  ;;  %v364_v50 = vadd.f32 %v663_v2, %v235_v39  ;;  %v131_v34 = vld [vmem:[#allocation4 + $0x310] sm:$0xff]  ;;  %v132_v39 = vld [vmem:[#allocation4 + $0x318] sm:$0xff] }
  0x42   :  { %v365_v51 = vadd.f32 %v663_v2, %v236_v40  ;;  %v240_v52 = vmul.f32 %v658_v0, %v111_v36  ;;  %490 = vst [vmem:[#allocation7 + $0x238] sm:$0xff] %v362_v42  ;;  %v366_v56 = vadd.f32 %v663_v2, %v237_v43  ;;  %v367_v57 = vadd.f32 %v663_v2, %v238_v44  ;;  %v133_v40 = vld [vmem:[#allocation4 + $0x320] sm:$0xff] }
  0x43   :  { %v368_v58 = vadd.f32 %v663_v2, %v239_v45  ;;  %v241_v59 = vmul.f32 %v658_v0, %v112_v41  ;;  %491 = vst [vmem:[#allocation7 + $0x240] sm:$0xff] %v363_v49  ;;  %492 = vst [vmem:[#allocation7 + $0x248] sm:$0xff] %v364_v50  ;;  %v242_v62 = vmul.f32 %v658_v0, %v113_v46  ;;  %v134_v41 = vld [vmem:[#allocation4 + $0x328] sm:$0xff]  ;;  %v135_v46 = vld [vmem:[#allocation4 + $0x330] sm:$0xff] }
  0x44   :  { %493 = vst [vmem:[#allocation7 + $0x250] sm:$0xff] %v365_v51  ;;  %v369_v61 = vadd.f32 %v663_v2, %v240_v52  ;;  %v243_v63 = vmul.f32 %v658_v0, %v114_v47  ;;  %v244_v1 = vmul.f32 %v658_v0, %v115_v48  ;;  %494 = vst [vmem:[#allocation7 + $0x258] sm:$0xff] %v366_v56  ;;  %v136_v51 = vld [vmem:[#allocation4 + $0x338] sm:$0xff]  ;;  %v137_v56 = vld [vmem:[#allocation4 + $0x340] sm:$0xff] }
  0x45   :  { %495 = vst [vmem:[#allocation7 + $0x260] sm:$0xff] %v367_v57  ;;  %496 = vst [vmem:[#allocation7 + $0x268] sm:$0xff] %v368_v58  ;;  %v370_v4 = vadd.f32 %v663_v2, %v241_v59  ;;  %v245_v5 = vmul.f32 %v658_v0, %v116_v53  ;;  %v246_v6 = vmul.f32 %v658_v0, %v117_v54  ;;  %v138_v57 = vld [vmem:[#allocation4 + $0x348] sm:$0xff]  ;;  %v139_v58 = vld [vmem:[#allocation4 + $0x350] sm:$0xff] }
  0x46   :  { %v247_v7 = vmul.f32 %v658_v0, %v118_v55  ;;  %497 = vst [vmem:[#allocation7 + $0x270] sm:$0xff] %v369_v61  ;;  %v371_v11 = vadd.f32 %v663_v2, %v242_v62  ;;  %v372_v12 = vadd.f32 %v663_v2, %v243_v63  ;;  %v373_v13 = vadd.f32 %v663_v2, %v244_v1  ;;  %v140_v63 = vld [vmem:[#allocation4 + $0x358] sm:$0xff]  ;;  %v141_v1 = vld [vmem:[#allocation4 + $0x360] sm:$0xff] }
  0x47   :  { %v248_v14 = vmul.f32 %v658_v0, %v119_v60  ;;  %498 = vst [vmem:[#allocation7 + $0x278] sm:$0xff] %v370_v4  ;;  %v374_v18 = vadd.f32 %v663_v2, %v245_v5  ;;  %v375_v19 = vadd.f32 %v663_v2, %v246_v6  ;;  %v249_v21 = vmul.f32 %v658_v0, %v120_v3  ;;  %v142_v3 = vld [vmem:[#allocation4 + $0x368] sm:$0xff] }
  0x48   :  { %v376_v20 = vadd.f32 %v663_v2, %v247_v7  ;;  %499 = vst [vmem:[#allocation7 + $0x280] sm:$0xff] %v371_v11  ;;  %500 = vst [vmem:[#allocation7 + $0x288] sm:$0xff] %v372_v12  ;;  %v250_v24 = vmul.f32 %v658_v0, %v121_v8  ;;  %v251_v25 = vmul.f32 %v658_v0, %v122_v9  ;;  %v143_v8 = vld [vmem:[#allocation4 + $0x370] sm:$0xff] }
  0x49   :  { %501 = vst [vmem:[#allocation7 + $0x290] sm:$0xff] %v373_v13  ;;  %v377_v23 = vadd.f32 %v663_v2, %v248_v14  ;;  %v252_v26 = vmul.f32 %v658_v0, %v123_v10  ;;  %502 = vst [vmem:[#allocation7 + $0x298] sm:$0xff] %v374_v18  ;;  %v378_v28 = vadd.f32 %v663_v2, %v249_v21  ;;  %v144_v13 = vld [vmem:[#allocation4 + $0x378] sm:$0xff]  ;;  %v145_v18 = vld [vmem:[#allocation4 + $0x380] sm:$0xff] }
  0x4a   :  { %503 = vst [vmem:[#allocation7 + $0x2a0] sm:$0xff] %v375_v19  ;;  %504 = vst [vmem:[#allocation7 + $0x2a8] sm:$0xff] %v376_v20  ;;  %v253_v29 = vmul.f32 %v658_v0, %v124_v15  ;;  %v254_v30 = vmul.f32 %v658_v0, %v125_v16  ;;  %v255_v31 = vmul.f32 %v658_v0, %v126_v17  ;;  %v146_v19 = vld [vmem:[#allocation4 + $0x388] sm:$0xff]  ;;  %v147_v20 = vld [vmem:[#allocation4 + $0x390] sm:$0xff] }
  0x4b   :  { %505 = vst [vmem:[#allocation7 + $0x2b0] sm:$0xff] %v377_v23  ;;  %v379_v35 = vadd.f32 %v663_v2, %v250_v24  ;;  %v380_v36 = vadd.f32 %v663_v2, %v251_v25  ;;  %v381_v37 = vadd.f32 %v663_v2, %v252_v26  ;;  %v256_v38 = vmul.f32 %v658_v0, %v127_v22  ;;  %v148_v25 = vld [vmem:[#allocation4 + $0x398] sm:$0xff]  ;;  %v149_v26 = vld [vmem:[#allocation4 + $0x3a0] sm:$0xff] }
  0x4c   :  { %506 = vst [vmem:[#allocation7 + $0x2b8] sm:$0xff] %v378_v28  ;;  %v382_v42 = vadd.f32 %v663_v2, %v253_v29  ;;  %v383_v43 = vadd.f32 %v663_v2, %v254_v30  ;;  %v384_v44 = vadd.f32 %v663_v2, %v255_v31  ;;  %v257_v45 = vmul.f32 %v658_v0, %v128_v27  ;;  %v150_v27 = vld [vmem:[#allocation4 + $0x3a8] sm:$0xff] }
  0x4d   :  { %507 = vst [vmem:[#allocation7 + $0x2c0] sm:$0xff] %v379_v35  ;;  %508 = vst [vmem:[#allocation7 + $0x2c8] sm:$0xff] %v380_v36  ;;  %v385_v47 = vadd.f32 %v663_v2, %v256_v38  ;;  %v258_v48 = vmul.f32 %v658_v0, %v129_v32  ;;  %v259_v49 = vmul.f32 %v658_v0, %v130_v33  ;;  %v151_v32 = vld [vmem:[#allocation4 + $0x3b0] sm:$0xff] }
  0x4e   :  { %509 = vst [vmem:[#allocation7 + $0x2d0] sm:$0xff] %v381_v37  ;;  %v260_v50 = vmul.f32 %v658_v0, %v131_v34  ;;  %510 = vst [vmem:[#allocation7 + $0x2d8] sm:$0xff] %v382_v42  ;;  %v386_v52 = vadd.f32 %v663_v2, %v257_v45  ;;  %v261_v53 = vmul.f32 %v658_v0, %v132_v39  ;;  %v152_v37 = vld [vmem:[#allocation4 + $0x3b8] sm:$0xff]  ;;  %v153_v42 = vld [vmem:[#allocation4 + $0x3c0] sm:$0xff] }
  0x4f   :  { %511 = vst [vmem:[#allocation7 + $0x2e0] sm:$0xff] %v383_v43  ;;  %512 = vst [vmem:[#allocation7 + $0x2e8] sm:$0xff] %v384_v44  ;;  %v262_v54 = vmul.f32 %v658_v0, %v133_v40  ;;  %v263_v55 = vmul.f32 %v658_v0, %v134_v41  ;;  %v387_v59 = vadd.f32 %v663_v2, %v258_v48  ;;  %v154_v43 = vld [vmem:[#allocation4 + $0x3c8] sm:$0xff]  ;;  %v155_v44 = vld [vmem:[#allocation4 + $0x3d0] sm:$0xff] }
  0x50   :  { %513 = vst [vmem:[#allocation7 + $0x2f0] sm:$0xff] %v385_v47  ;;  %v388_v60 = vadd.f32 %v663_v2, %v259_v49  ;;  %v389_v61 = vadd.f32 %v663_v2, %v260_v50  ;;  %v264_v62 = vmul.f32 %v658_v0, %v135_v46  ;;  %514 = vst [vmem:[#allocation7 + $0x2f8] sm:$0xff] %v386_v52  ;;  %v156_v49 = vld [vmem:[#allocation4 + $0x3d8] sm:$0xff]  ;;  %v157_v50 = vld [vmem:[#allocation4 + $0x3e0] sm:$0xff] }
  0x51   :  { %v390_v4 = vadd.f32 %v663_v2, %v261_v53  ;;  %v391_v5 = vadd.f32 %v663_v2, %v262_v54  ;;  %v392_v6 = vadd.f32 %v663_v2, %v263_v55  ;;  %v265_v7 = vmul.f32 %v658_v0, %v136_v51  ;;  %515 = vst [vmem:[#allocation7 + $0x300] sm:$0xff] %v387_v59  ;;  %v158_v51 = vld [vmem:[#allocation4 + $0x3e8] sm:$0xff] }
  0x52   :  { %516 = vst [vmem:[#allocation7 + $0x308] sm:$0xff] %v388_v60  ;;  %517 = vst [vmem:[#allocation7 + $0x310] sm:$0xff] %v389_v61  ;;  %v393_v9 = vadd.f32 %v663_v2, %v264_v62  ;;  %v266_v10 = vmul.f32 %v658_v0, %v137_v56  ;;  %v267_v11 = vmul.f32 %v658_v0, %v138_v57  ;;  %v159_v56 = vld [vmem:[#allocation4 + $0x3f0] sm:$0xff]  ;;  %v160_v61 = vld [vmem:[#allocation4 + $0x3f8] sm:$0xff] }
  0x53   :  { %v268_v12 = vmul.f32 %v658_v0, %v139_v58  ;;  %518 = vst [vmem:[#allocation7 + $0x318] sm:$0xff] %v390_v4  ;;  %519 = vst [vmem:[#allocation7 + $0x320] sm:$0xff] %v391_v5  ;;  %v394_v14 = vadd.f32 %v663_v2, %v265_v7  ;;  %v269_v15 = vmul.f32 %v658_v0, %v140_v63 }
  0x54   :  { %520 = vst [vmem:[#allocation7 + $0x328] sm:$0xff] %v392_v6  ;;  %v270_v16 = vmul.f32 %v658_v0, %v141_v1  ;;  %v271_v17 = vmul.f32 %v658_v0, %v142_v3  ;;  %521 = vst [vmem:[#allocation7 + $0x330] sm:$0xff] %v393_v9  ;;  %v395_v21 = vadd.f32 %v663_v2, %v266_v10 }
  0x55   :  { %v396_v22 = vadd.f32 %v663_v2, %v267_v11  ;;  %v397_v23 = vadd.f32 %v663_v2, %v268_v12  ;;  %v272_v24 = vmul.f32 %v658_v0, %v143_v8  ;;  %522 = vst [vmem:[#allocation7 + $0x338] sm:$0xff] %v394_v14  ;;  %v398_v28 = vadd.f32 %v663_v2, %v269_v15 }
  0x56   :  { %v399_v29 = vadd.f32 %v663_v2, %v270_v16  ;;  %v400_v30 = vadd.f32 %v663_v2, %v271_v17  ;;  %v273_v31 = vmul.f32 %v658_v0, %v144_v13  ;;  %523 = vst [vmem:[#allocation7 + $0x340] sm:$0xff] %v395_v21  ;;  %v274_v34 = vmul.f32 %v658_v0, %v145_v18 }
  0x57   :  { %524 = vst [vmem:[#allocation7 + $0x348] sm:$0xff] %v396_v22  ;;  %525 = vst [vmem:[#allocation7 + $0x350] sm:$0xff] %v397_v23  ;;  %v401_v33 = vadd.f32 %v663_v2, %v272_v24  ;;  %v275_v35 = vmul.f32 %v658_v0, %v146_v19  ;;  %v276_v36 = vmul.f32 %v658_v0, %v147_v20 }
  0x58   :  { %526 = vst [vmem:[#allocation7 + $0x358] sm:$0xff] %v398_v28  ;;  %527 = vst [vmem:[#allocation7 + $0x360] sm:$0xff] %v399_v29  ;;  %v402_v38 = vadd.f32 %v663_v2, %v273_v31  ;;  %v277_v39 = vmul.f32 %v658_v0, %v148_v25  ;;  %v278_v40 = vmul.f32 %v658_v0, %v149_v26 }
  0x59   :  { %528 = vst [vmem:[#allocation7 + $0x368] sm:$0xff] %v400_v30  ;;  %v279_v41 = vmul.f32 %v658_v0, %v150_v27  ;;  %529 = vst [vmem:[#allocation7 + $0x370] sm:$0xff] %v401_v33  ;;  %v403_v45 = vadd.f32 %v663_v2, %v274_v34  ;;  %v404_v46 = vadd.f32 %v663_v2, %v275_v35 }
  0x5a   :  { %v405_v47 = vadd.f32 %v663_v2, %v276_v36  ;;  %v280_v48 = vmul.f32 %v658_v0, %v151_v32  ;;  %530 = vst [vmem:[#allocation7 + $0x378] sm:$0xff] %v402_v38  ;;  %v406_v52 = vadd.f32 %v663_v2, %v277_v39  ;;  %v407_v53 = vadd.f32 %v663_v2, %v278_v40 }
  0x5b   :  { %v408_v54 = vadd.f32 %v663_v2, %v279_v41  ;;  %v281_v55 = vmul.f32 %v658_v0, %v152_v37  ;;  %531 = vst [vmem:[#allocation7 + $0x380] sm:$0xff] %v403_v45  ;;  %532 = vst [vmem:[#allocation7 + $0x388] sm:$0xff] %v404_v46  ;;  %v282_v58 = vmul.f32 %v658_v0, %v153_v42 }
  0x5c   :  { %533 = vst [vmem:[#allocation7 + $0x390] sm:$0xff] %v405_v47  ;;  %v409_v57 = vadd.f32 %v663_v2, %v280_v48  ;;  %v283_v59 = vmul.f32 %v658_v0, %v154_v43  ;;  %v284_v60 = vmul.f32 %v658_v0, %v155_v44  ;;  %534 = vst [vmem:[#allocation7 + $0x398] sm:$0xff] %v406_v52 }
  0x5d   :  { %535 = vst [vmem:[#allocation7 + $0x3a0] sm:$0xff] %v407_v53  ;;  %536 = vst [vmem:[#allocation7 + $0x3a8] sm:$0xff] %v408_v54  ;;  %v410_v62 = vadd.f32 %v663_v2, %v281_v55  ;;  %v285_v63 = vmul.f32 %v658_v0, %v156_v49  ;;  %v286_v1 = vmul.f32 %v658_v0, %v157_v50 }
  0x5e   :  { %v287_v3 = vmul.f32 %v658_v0, %v158_v51  ;;  %537 = vst [vmem:[#allocation7 + $0x3b0] sm:$0xff] %v409_v57  ;;  %v411_v4 = vadd.f32 %v663_v2, %v282_v58  ;;  %v412_v5 = vadd.f32 %v663_v2, %v283_v59  ;;  %v413_v6 = vadd.f32 %v663_v2, %v284_v60 }
  0x5f   :  { %v288_v7 = vmul.f32 %v658_v0, %v159_v56  ;;  %538 = vst [vmem:[#allocation7 + $0x3b8] sm:$0xff] %v410_v62  ;;  %v414_v8 = vadd.f32 %v663_v2, %v285_v63  ;;  %v415_v9 = vadd.f32 %v663_v2, %v286_v1  ;;  %v289_v11 = vmul.f32 %v658_v0, %v160_v61 }
  0x60   :  { %v416_v10 = vadd.f32 %v663_v2, %v287_v3  ;;  %539 = vst [vmem:[#allocation7 + $0x3c0] sm:$0xff] %v411_v4  ;;  %540 = vst [vmem:[#allocation7 + $0x3c8] sm:$0xff] %v412_v5 }
  0x61   :  { %541 = vst [vmem:[#allocation7 + $0x3d0] sm:$0xff] %v413_v6  ;;  %v417_v12 = vadd.f32 %v663_v2, %v288_v7  ;;  %542 = vst [vmem:[#allocation7 + $0x3d8] sm:$0xff] %v414_v8  ;;  %v418_v13 = vadd.f32 %v663_v2, %v289_v11 }
  0x62   :  { %543 = vst [vmem:[#allocation7 + $0x3e0] sm:$0xff] %v415_v9  ;;  %544 = vst [vmem:[#allocation7 + $0x3e8] sm:$0xff] %v416_v10 }
  0x63   :  { %545 = vst [vmem:[#allocation7 + $0x3f0] sm:$0xff] %v417_v12  ;;  %546 = vst [vmem:[#allocation7 + $0x3f8] sm:$0xff] %v418_v13 }
  0x64   :  { %601 = shalt.err (!%p598_p12)
}
  0x65   :  { %s602_s5 = scalar_lea.hbm %s939_s3, 16384 }
  0x66   :  { %p603_p13 = scmp.ne.s32.totalorder %s939_s3, %s602_s5  ;;  %p606_p0 = scmp.lt.u32.totalorder %s602_s5, %s939_s3 }
  0x68   :  { %p608_p1 = pnand %p606_p0, %p603_p13 }
  0x6a   :  { %611 = shalt.err (!%p608_p1)
}
  0x6b   :  { %558 = dma.vmem_to_hbm [thread:$0]  %s553_s1, 16384, %s939_s3, [#allocation6], %s617_s22, %s617_s22, %s618_s23  }
  0x6c   :  { %614 = dma.done.wait [#allocation6], 16384  }
  0x6d   :  { %615 = vsyncadd [#allocation6], 4294950912 }
  0x6e   :  { %562 = vsyncpa [#allocation5], 1 }
  0x6f   :  { %563 = vsyncpa [#allocation6], 1 }

</bundles_post_ra>
